<compile_context>
chip_gen: v6e
topology: v6e:2x2x1
jax: 0.10.0
libtpu: 0.0.40
codegen_flags: <defaults>
</compile_context>

<pallas_src>
import jax
import jax.numpy as jnp
from jax.experimental import pallas as pl
from jax.experimental.pallas import tpu as pltpu


def _round_up(x, m):
    return (x + m - 1) // m * m


# ----------------------------------------------------------------------------
# Fused kernel: o = relu(x @ W1 + b1) @ W2 + b2   (one tile of rows per step)
# ----------------------------------------------------------------------------
def _mlp_kernel(x_ref, w1_ref, b1_ref, w2_ref, b2_ref, o_ref):
    # MXU in the (possibly bf16) compute dtype, f32 accumulation + epilogue.
    h = jnp.dot(x_ref[...], w1_ref[...], preferred_element_type=jnp.float32)
    h = jnp.maximum(h + b1_ref[...], 0.0)              # bias [1,N1] broadcasts
    o = jnp.dot(h.astype(w2_ref.dtype), w2_ref[...],
                preferred_element_type=jnp.float32)
    o_ref[...] = (o + b2_ref[...]).astype(o_ref.dtype)


def extractor_cartpole_forward(
    x,
    params,
    *,
    compute_dtype=jnp.bfloat16,   # MXU input dtype (x, W1, W2)
    out_dtype=jnp.float32,        # bf16 here halves HBM writeback if tolerated
    max_tile_m=4096,              # rows per grid step (primary perf knob)
    min_pallas_batch=1024,        # below this: plain fused jnp (overhead wins)
    force_pallas=False,
):
    """Forward pass of ExtractorCartpole: relu(x @ W1 + b1) @ W2 + b2."""
    B, K = x.shape
    w1, b1, w2, b2 = params["w1"], params["b1"], params["w2"], params["b2"]
    assert w1.shape[0] == K, (w1.shape, K)
    N1 = w1.shape[1]
    N2 = w2.shape[1]

    # ---- small-batch dispatch: a single fused XLA dot beats any kernel here
    if B < min_pallas_batch and not force_pallas:
        h = jnp.maximum(
            x.astype(jnp.float32) @ w1.astype(jnp.float32)
            + b1.astype(jnp.float32), 0.0)
        return (h @ w2.astype(jnp.float32) + b2.astype(jnp.float32)).astype(out_dtype)

    # ---- row tiling: >=2 (even) tiles so both v7x TCs get work; tile sized to
    #      the batch so pad waste stays <= 7 rows.
    n_tiles = max(2, pl.cdiv(B, max_tile_m))
    if n_tiles % 2:
        n_tiles += 1
    tile_m = max(_round_up(pl.cdiv(B, n_tiles), 8), 8)
    Mp = _round_up(B, tile_m)
    grid = (Mp // tile_m,)

    xp = x.astype(compute_dtype)
    if Mp != B:
        xp = jnp.pad(xp, ((0, Mp - B), (0, 0)))

    in_isz = jnp.dtype(compute_dtype).itemsize
    out_isz = jnp.dtype(out_dtype).itemsize
    flops = 2 * Mp * (K * N1 + N1 * N2)
    bytes_accessed = (Mp * K * in_isz
                      + (K * N1 + N1 * N2) * in_isz
                      + (N1 + N2) * 4
                      + Mp * N2 * out_isz)

    out = pl.pallas_call(
        _mlp_kernel,
        out_shape=jax.ShapeDtypeStruct((Mp, N2), out_dtype),
        grid=grid,
        in_specs=[
            pl.BlockSpec((tile_m, K), lambda i: (i, 0)),   # x rows (tiled)
            pl.BlockSpec((K, N1), lambda i: (0, 0)),       # W1 (VMEM-resident)
            pl.BlockSpec((1, N1), lambda i: (0, 0)),       # b1 (f32)
            pl.BlockSpec((N1, N2), lambda i: (0, 0)),      # W2 (VMEM-resident)
            pl.BlockSpec((1, N2), lambda i: (0, 0)),       # b2 (f32)
        ],
        out_specs=pl.BlockSpec((tile_m, N2), lambda i: (i, 0)),
        compiler_params=pltpu.CompilerParams(
            dimension_semantics=("parallel",),             # shard rows across TCs
            vmem_limit_bytes=32 * 1024 * 1024,             # > v5e 16 MiB default,
                                                           # < v7x 64 MiB physical
        ),
        cost_estimate=pl.CostEstimate(
            flops=flops, transcendentals=0, bytes_accessed=bytes_accessed
        ),
    )(
        xp,
        w1.astype(compute_dtype),
        b1.reshape(1, N1).astype(jnp.float32),
        w2.astype(compute_dtype),
        b2.reshape(1, N2).astype(jnp.float32),
    )
    return out[:B]


# ----------------------------------------------------------------------------
# Parameter init (deterministic, matches PyTorch nn.Linear shapes)
# ----------------------------------------------------------------------------
def init_params(key):
    k1, k2, k3, k4 = jax.random.split(key, 4)
    # PyTorch: l1.weight [64, 4], l1.bias [64]; l2.weight [64, 64], l2.bias [64].
    w1_pt = jax.random.normal(k1, (64, 4), jnp.float32) * 0.1
    b1 = jax.random.normal(k2, (64,), jnp.float32) * 0.1
    w2_pt = jax.random.normal(k3, (64, 64), jnp.float32) * 0.1
    b2 = jax.random.normal(k4, (64,), jnp.float32) * 0.1
    # Store transposed ([in, out]) so the kernel does x @ W directly.
    return {"w1": w1_pt.T, "b1": b1, "w2": w2_pt.T, "b2": b2}


def _reference_forward(x, params):
    h = jnp.maximum(x.astype(jnp.float32) @ params["w1"] + params["b1"], 0.0)
    return h @ params["w2"] + params["b2"]


# ----------------------------------------------------------------------------
if __name__ == "__main__":
    key = jax.random.PRNGKey(0)
    kx, kp = jax.random.split(key, 2)

    # Small Cartpole-shaped input: [B, 4] observations.
    B = 2
    x = jax.random.normal(kx, (B, 4), jnp.float32)
    params = init_params(kp)
    ref = _reference_forward(x, params)

    # 1) Pallas path forced at small B with f32 MXU inputs: exact check.
    fwd_f32 = jax.jit(lambda a: extractor_cartpole_forward(
        a, params, compute_dtype=jnp.float32, force_pallas=True))
    out_f32 = jax.block_until_ready(fwd_f32(x))
    assert out_f32.shape == (B, 64), out_f32.shape
    assert out_f32.dtype == jnp.float32
    assert jnp.allclose(out_f32, ref, rtol=1e-5, atol=1e-5), float(
        jnp.max(jnp.abs(out_f32 - ref)))

    # 2) Default (bf16 MXU inputs, f32 accumulate) path forced at small B.
    fwd_bf16 = jax.jit(lambda a: extractor_cartpole_forward(
        a, params, force_pallas=True))
    out_bf16 = jax.block_until_ready(fwd_bf16(x))
    assert jnp.allclose(out_bf16, ref, rtol=2e-2, atol=2e-2), float(
        jnp.max(jnp.abs(out_bf16 - ref)))

    # 3) Larger batch through the default dispatch (multi-tile Pallas grid).
    B2 = 2048
    x2 = jax.random.normal(jax.random.PRNGKey(1), (B2, 4), jnp.float32)
    fwd_big = jax.jit(lambda a: extractor_cartpole_forward(a, params))
    out2 = jax.block_until_ready(fwd_big(x2))
    ref2 = _reference_forward(x2, params)
    assert out2.shape == (B2, 64), out2.shape
    assert jnp.allclose(out2, ref2, rtol=2e-2, atol=2e-2), float(
        jnp.max(jnp.abs(out2 - ref2)))

    print("KERNEL_OK")
</pallas_src>

<mosaic_0001>
module attributes {stable_mosaic.version = 11 : i64} {
  func.func @_mlp_kernel(%arg0: i32, %arg1: memref<8x4xf32, #tpu.memory_space<vmem>>, %arg2: memref<4x64xf32, #tpu.memory_space<vmem>>, %arg3: memref<1x64xf32, #tpu.memory_space<vmem>>, %arg4: memref<64x64xf32, #tpu.memory_space<vmem>>, %arg5: memref<1x64xf32, #tpu.memory_space<vmem>>, %arg6: memref<8x64xf32, #tpu.memory_space<vmem>>) attributes {dimension_semantics = [#tpu.dimension_semantics<parallel>], iteration_bounds = array<i64: 1>, scalar_prefetch = 0 : i64, scratch_operands = 0 : i64, tpu.core_type = #tpu.core_type<tc>, window_params = [{transform_indices = @transform_0, window_bounds = array<i64: 8, 4>}, {pipeline_mode = #tpu.pipeline_mode<synchronous>, transform_indices = @transform_1, window_bounds = array<i64: 4, 64>}, {pipeline_mode = #tpu.pipeline_mode<synchronous>, transform_indices = @transform_2, window_bounds = array<i64: 1, 64>}, {pipeline_mode = #tpu.pipeline_mode<synchronous>, transform_indices = @transform_3, window_bounds = array<i64: 64, 64>}, {pipeline_mode = #tpu.pipeline_mode<synchronous>, transform_indices = @transform_4, window_bounds = array<i64: 1, 64>}, {transform_indices = @transform_5, window_bounds = array<i64: 8, 64>}]} {
    %c0 = arith.constant 0 : index
    %c0_0 = arith.constant 0 : index
    %0 = vector.load %arg1[%c0, %c0_0] : memref<8x4xf32, #tpu.memory_space<vmem>>, vector<8x4xf32>
    %c0_1 = arith.constant 0 : index
    %c0_2 = arith.constant 0 : index
    %1 = vector.load %arg2[%c0_1, %c0_2] : memref<4x64xf32, #tpu.memory_space<vmem>>, vector<4x64xf32>
    %cst = arith.constant dense<0.000000e+00> : vector<8x64xf32>
    %2 = tpu.matmul %0, %1, %cst {dimension_numbers = #tpu.dot_dimension_numbers<[1], [0], [0], [1], [0, 0, 1, 1], [], []>} : vector<8x4xf32>, vector<4x64xf32>, vector<8x64xf32> -> vector<8x64xf32>
    %c0_3 = arith.constant 0 : index
    %c0_4 = arith.constant 0 : index
    %3 = vector.load %arg3[%c0_3, %c0_4] : memref<1x64xf32, #tpu.memory_space<vmem>>, vector<1x64xf32>
    %4 = vector.broadcast %3 : vector<1x64xf32> to vector<8x64xf32>
    %5 = arith.addf %2, %4 : vector<8x64xf32>
    %cst_5 = arith.constant 0.000000e+00 : f32
    %6 = vector.broadcast %cst_5 : f32 to vector<8x64xf32>
    %7 = arith.maximumf %5, %6 : vector<8x64xf32>
    %c0_6 = arith.constant 0 : index
    %c0_7 = arith.constant 0 : index
    %8 = vector.load %arg4[%c0_6, %c0_7] : memref<64x64xf32, #tpu.memory_space<vmem>>, vector<64x64xf32>
    %cst_8 = arith.constant dense<0.000000e+00> : vector<8x64xf32>
    %9 = tpu.matmul %7, %8, %cst_8 {dimension_numbers = #tpu.dot_dimension_numbers<[1], [0], [0], [1], [0, 0, 1, 1], [], []>} : vector<8x64xf32>, vector<64x64xf32>, vector<8x64xf32> -> vector<8x64xf32>
    %c0_9 = arith.constant 0 : index
    %c0_10 = arith.constant 0 : index
    %10 = vector.load %arg5[%c0_9, %c0_10] : memref<1x64xf32, #tpu.memory_space<vmem>>, vector<1x64xf32>
    %11 = vector.broadcast %10 : vector<1x64xf32> to vector<8x64xf32>
    %12 = arith.addf %9, %11 : vector<8x64xf32>
    %c0_11 = arith.constant 0 : index
    %c0_12 = arith.constant 0 : index
    %13 = vector.load %arg6[%c0_11, %c0_12] : memref<8x64xf32, #tpu.memory_space<vmem>>, vector<8x64xf32>
    tpu.vector_store %arg6[%c0_11, %c0_12], %12 {strides = array<i32>} : memref<8x64xf32, #tpu.memory_space<vmem>>, vector<8x64xf32>,
    return
  }
  func.func @transform_0(%arg0: i32) -> (i32, i32) {
    %c0_i32 = arith.constant 0 : i32
    %c0_i32_0 = arith.constant 0 : i32
    return %arg0, %c0_i32 : i32, i32
  }
  func.func @transform_1(%arg0: i32) -> (i32, i32) {
    %c0_i32 = arith.constant 0 : i32
    %c0_i32_0 = arith.constant 0 : i32
    %c0_i32_1 = arith.constant 0 : i32
    return %c0_i32, %c0_i32_0 : i32, i32
  }
  func.func @transform_2(%arg0: i32) -> (i32, i32) {
    %c0_i32 = arith.constant 0 : i32
    %c0_i32_0 = arith.constant 0 : i32
    %c0_i32_1 = arith.constant 0 : i32
    return %c0_i32, %c0_i32_0 : i32, i32
  }
  func.func @transform_3(%arg0: i32) -> (i32, i32) {
    %c0_i32 = arith.constant 0 : i32
    %c0_i32_0 = arith.constant 0 : i32
    %c0_i32_1 = arith.constant 0 : i32
    return %c0_i32, %c0_i32_0 : i32, i32
  }
  func.func @transform_4(%arg0: i32) -> (i32, i32) {
    %c0_i32 = arith.constant 0 : i32
    %c0_i32_0 = arith.constant 0 : i32
    %c0_i32_1 = arith.constant 0 : i32
    return %c0_i32, %c0_i32_0 : i32, i32
  }
  func.func @transform_5(%arg0: i32) -> (i32, i32) {
    %c0_i32 = arith.constant 0 : i32
    %c0_i32_0 = arith.constant 0 : i32
    return %arg0, %c0_i32 : i32, i32
  }
}

</mosaic_0001>

<bundles_post_ra>
// kernel: _lambda_.1
= control target key start
LH: loop header
LB: loop body
LE: loop exit
PB: predicated region body
PF: predicated region fallthrough
CT: control target
= control target key end

     0   :  { %10 = vsyncpa [#allocation3], 0  ;;  %s284_s18 = smov [#allocation2]   ;;  %s337_s0 = inlined_call_operand.vmem [shape: f32[8,4], index: 0, kind: input, shape index: {}]   ;;  %s338_s1 = inlined_call_operand.vmem [shape: f32[4,64], index: 1, kind: input, shape index: {}]   ;;  %s339_s2 = inlined_call_operand.vmem [shape: f32[1,64], index: 2, kind: input, shape index: {}]   ;;  %s340_s3 = inlined_call_operand.hbm [shape: f32[64,64], index: 3, kind: input, shape index: {}]   ;;  %s341_s4 = inlined_call_operand.vmem [shape: f32[1,64], index: 4, kind: input, shape index: {}]   ;;  %s342_s5 = inlined_call_operand.vmem [shape: f32[8,64], index: 5, kind: output, shape index: {}]  }
   0x1   :  { %s22_s19 = sshll.u32 %s284_s18, 4  ;;  %s23_s19 = int_to_ptr.vmem [resolvable:$true] %s22_s19 }
   0x2   :  { %s270_s20 = scalar_lea.vmem %s23_s19, 1024  ;;  %p275_p1 = scmp.lt.s32.totalorder %s23_s19, %s23_s19 }
   0x3   :  { %p271_p0 = scmp.ne.s32.totalorder %s23_s19, %s270_s20  ;;  %p276_p2 = scmp.lt.s32.totalorder %s270_s20, %s270_s20 }
   0x5   :  { %p277_p3 = por %p276_p2, %p275_p1 }
   0x7   :  { %p278_p4 = pnand %p277_p3, %p271_p0 }
   0x9   :  { %281 = shalt.err (!%p278_p4)
}
   0xa   :  { %s285_s21 = smov 128   ;;  %s286_s22 = smov 8  }
   0xb   :  { %28 = dma.hbm_to_vmem [thread:$0]  %s340_s3, 1024, %s23_s19, [#allocation3], %s285_s21, %s285_s21, %s286_s22  }
   0xc   :  { %282 = dma.done.wait [#allocation3], 1024  }
   0xd   :  { %283 = vsyncadd [#allocation3], 4294966272  ;;  %v287_v0 = vmov 0.0   ;;  %vm288_vm0 = vmmov 0   ;;  %vm47_vm1 = vcmask 1043456   ;;  %vm43_vm2 = vcmask 31744  }
   0xe   :  { %233 = vmatprep.subr.mxu0 %v287_v0  ;;  %235 = vmatprep.mubr.msk.f32.mxu0 %vm288_vm0, %v287_v0  ;;  %v35_v1 = vld [vmem:[%s338_s1] sm:$0xf]  ;;  %v129_v3 = vld [vmem:[#allocation2 + $0x38] sm:$0xff]  ;;  %v128_v4 = vld [vmem:[#allocation2 + $0x30] sm:$0xff]  ;;  %vm137_vm3 = vcmask 523264  }
   0xf   :  { %238 = vmatprep.subr.mxu1 %v287_v0  ;;  %254 = vmatprep.mubr.msk.f32.mxu1 %vm288_vm0, %v287_v0  ;;  %v34_v2 = vld [vmem:[%s337_s0] sm:$0xff]  ;;  %v127_v5 = vld [vmem:[#allocation2 + $0x28] sm:$0xff]  ;;  %v125_v7 = vld [vmem:[#allocation2 + $0x18] sm:$0xff] }
  0x10   :  { %234 = vmatpush3.msk.msra.mxu0 %vm47_vm1, %v35_v1  ;;  %239 = vmatpush3.msra.mxu1 %v129_v3  ;;  %v126_v6 = vld [vmem:[#allocation2 + $0x20] sm:$0xff]  ;;  %v124_v8 = vld [vmem:[#allocation2 + $0x10] sm:$0xff]  ;;  %v123_v9 = vld [vmem:[#allocation2 + $0x8] sm:$0xff] }
  0x11   :  { %236 = vmatmul.mubr.msk.f32.vlgmr.msra.gmra.mxu0 %vm43_vm2, %v34_v2  ;;  %240 = vmatprep.subr.mxu1 %v287_v0  ;;  %v122_v10 = vld [vmem:[#allocation2] sm:$0xff] }
  0x12   :  { %241 = vmatpush3.msra.mxu1 %v128_v4  ;;  %v217_v11 = vld [vmem:[%s339_s2] ss:$0 sm:$0xff] }
  0x13   :  { %242 = vmatprep.subr.mxu1 %v287_v0  ;;  %v220_v16 = vld [vmem:[%s341_s4] ss:$0 sm:$0xff] }
  0x14   :  { %243 = vmatpush3.msra.mxu1 %v127_v5 }
  0x15   :  { %244 = vmatprep.subr.mxu1 %v287_v0 }
  0x16   :  { %245 = vmatpush3.msra.mxu1 %v126_v6 }
  0x17   :  { %246 = vmatprep.subr.mxu1 %v287_v0 }
  0x18   :  { %247 = vmatpush3.msra.mxu1 %v125_v7 }
  0x19   :  { %248 = vmatprep.subr.mxu1 %v287_v0 }
  0x1a   :  { %249 = vmatpush3.msra.mxu1 %v124_v8 }
  0x1b   :  { %250 = vmatprep.subr.mxu1 %v287_v0 }
  0x1c   :  { %251 = vmatpush3.msra.mxu1 %v123_v9 }
  0x1d   :  { %252 = vmatprep.subr.mxu1 %v287_v0 }
  0x1e   :  { %253 = vmatpush3.msra.mxu1 %v122_v10 }
  0xd1   :  { %v117_v12 = vpop.f32.mrf.mxu0 }
  0xd2   :  { %v118_v13 = vadd.f32 %v217_v11, %v117_v12 }
  0xd3   :  { %v237_v14 = vpop.f32.mrf.mxu0 }
  0xd4   :  { %v121_v15 = vmax.f32 %v118_v13, 0.0 }
  0xd6   :  { %255 = vmatmul.mubr.msk.f32.vlgmr.msra.gmra.mxu1 %vm137_vm3, %v121_v15 }
 0x196   :  { %v207_v17 = vpop.f32.mrf.mxu1 }
 0x197   :  { %v208_v18 = vadd.f32 %v220_v16, %v207_v17 }
 0x198   :  { %v256_v19 = vpop.f32.mrf.mxu1 }
 0x199   :  { %211 = vst.msk [vmem:[%s342_s5] sm:$0xff] %vm137_vm3, %v208_v18 }
 0x19a   :  { %216 = vsyncpa [#allocation3], 1 }

</bundles_post_ra>
